<compile_context>
chip_gen: v7x
topology: tpu7x:2x2x1
jax: 0.10.0
libtpu: 0.0.40
codegen_flags: <defaults>
</compile_context>

<pallas_src>
import jax
import jax.numpy as jnp
from jax.experimental import pallas as pl
from jax.experimental.pallas import tpu as pltpu


LANES = 128           # TPU lane width; fc2 output dim (10) is padded to this
TB_MAX_F32 = 1024     # max batch-tile rows for 4-byte inputs
TB_MAX_NARROW = 2048  # max batch-tile rows for bf16 / int8 inputs


def mlp_kernel(x_ref, w1_ref, b1_ref, w2_ref, b2_ref, o_ref):
    # fc1: bf16 MXU matmul (784 -> 256), f32 accumulate. Casting here is a
    # no-op when inputs are already bf16 and avoids the slow f32 MXU path on
    # v5e when they are not.
    x = x_ref[...].astype(jnp.bfloat16)
    w1 = w1_ref[...].astype(jnp.bfloat16)
    h = jnp.dot(x, w1, preferred_element_type=jnp.float32)
    # Bias + ReLU in f32 on the VPU (v5e VPU has no bf16 path).
    h = jnp.maximum(h + b1_ref[...].astype(jnp.float32), 0.0)
    # fc2: bf16 MXU matmul (256 -> 128 lane-padded), f32 accumulate, bias in f32.
    y = jnp.dot(h.astype(jnp.bfloat16), w2_ref[...].astype(jnp.bfloat16),
                preferred_element_type=jnp.float32)
    y = y + b2_ref[...].astype(jnp.float32)
    o_ref[...] = y.astype(o_ref.dtype)


def mlpnet_forward(x, w1, b1, w2, b2):
    """MLPNet forward. x: any shape whose trailing dims flatten to 784.

    w1: [784, 256], b1: [1, 256], w2: [256, 10], b2: [1, 10]
    (weights transposed vs. PyTorch's nn.Linear storage).

    Perf contract: pass x / w1 / w2 already in bf16 (cast them where they are
    produced, not here) — the kernel is HBM-bound on x and halving its bytes is
    the dominant win. Matmuls always run bf16 on the MXU with f32 accumulation;
    biases may stay f32. Output dtype matches x's dtype.
    """
    K, H = w1.shape           # 784, 256
    C = w2.shape[1]           # 10

    x2d = x.reshape(-1, K)    # glue: view(-1, 784); metadata-only reshape
    B = x2d.shape[0]

    # ---- batch tile selection -----------------------------------------------
    itemsize = jnp.dtype(x2d.dtype).itemsize
    sub = max(8, 32 // itemsize)                    # 8 (f32) / 16 (bf16) / 32 (int8)
    tb_max = TB_MAX_F32 if itemsize >= 4 else TB_MAX_NARROW
    if B <= sub:
        TB = sub
    else:
        # >= 2 grid steps whenever possible so both v7x TensorCores get work;
        # capped at tb_max to bound VMEM and keep the pipeline deep for big B.
        TB = min(tb_max, sub * pl.cdiv(pl.cdiv(B, 2), sub))
    grid = (pl.cdiv(B, TB),)
    # NOTE: no jnp.pad of x. If TB does not divide B, the last grid step's
    # out-of-bounds rows are handled by Pallas boundary masking (garbage rows
    # only produce garbage rows that are dropped on the output writeback).

    # ---- lane-pad the tiny fc2 output dim 10 -> 128 (zeros are inert) -------
    C_pad = LANES * pl.cdiv(C, LANES)
    w2p = jnp.pad(w2, ((0, 0), (0, C_pad - C))) if C_pad != C else w2
    b2p = jnp.pad(b2, ((0, 0), (0, C_pad - C))) if C_pad != C else b2

    out = pl.pallas_call(
        mlp_kernel,
        out_shape=jax.ShapeDtypeStruct((B, C_pad), x2d.dtype),
        grid_spec=pltpu.PrefetchScalarGridSpec(
            num_scalar_prefetch=0,
            grid=grid,
            in_specs=[
                # x: one batch tile per grid step -> auto double-buffered DMA.
                pl.BlockSpec((TB, K), lambda i: (i, 0)),
                # Weights / biases: constant block index -> fetched once, VMEM-resident.
                pl.BlockSpec((K, H), lambda i: (0, 0)),
                pl.BlockSpec((1, H), lambda i: (0, 0)),
                pl.BlockSpec((H, C_pad), lambda i: (0, 0)),
                pl.BlockSpec((1, C_pad), lambda i: (0, 0)),
            ],
            out_specs=pl.BlockSpec((TB, C_pad), lambda i: (i, 0)),
        ),
        compiler_params=pltpu.CompilerParams(
            # Independent batch tiles -> shard across v7x's 2 TensorCores.
            dimension_semantics=("parallel",),
            # Headroom for the larger tiles; raises v5e's 16 MiB default,
            # no-op on v6e/v7x (32 MiB default), well under v7x's 64 MiB physical.
            vmem_limit_bytes=32 * 1024 * 1024,
        ),
    )(x2d, w1, b1, w2p, b2p)

    # Strip the lane padding (cheap; fuses with downstream ops under jit).
    return out[:, :C]


def init_params(key):
    """Deterministic synthetic parameters matching nn.Linear shapes.

    PyTorch: fc1.weight [256, 784], fc1.bias [256]; fc2.weight [10, 256], fc2.bias [10].
    Stored transposed ([in, out]) for the x @ W layout.
    """
    k1, k2, k3, k4 = jax.random.split(key, 4)
    lim1 = 1.0 / jnp.sqrt(784.0)
    lim2 = 1.0 / jnp.sqrt(256.0)
    w1 = jax.random.uniform(k1, (784, 256), jnp.float32, -lim1, lim1)
    b1 = jax.random.uniform(k2, (1, 256), jnp.float32, -lim1, lim1)
    w2 = jax.random.uniform(k3, (256, 10), jnp.float32, -lim2, lim2)
    b2 = jax.random.uniform(k4, (1, 10), jnp.float32, -lim2, lim2)
    return w1, b1, w2, b2


if __name__ == "__main__":
    key = jax.random.PRNGKey(0)
    kx, kp = jax.random.split(key)

    # MNIST-like input: [B, 1, 28, 28] (NCHW); forward flattens to [B, 784].
    B = 16
    x_f32 = jax.random.normal(kx, (B, 1, 28, 28), jnp.float32)
    w1_f32, b1, w2_f32, b2 = init_params(kp)

    # Push the bf16 cast upstream (where x / weights are produced) so the
    # kernel's HBM traffic is already half-width. Biases stay f32.
    x = x_f32.astype(jnp.bfloat16)
    w1 = w1_f32.astype(jnp.bfloat16)
    w2 = w2_f32.astype(jnp.bfloat16)

    fwd = jax.jit(mlpnet_forward)
    out = jax.block_until_ready(fwd(x, w1, b1, w2, b2))

    # Reference in plain JAX, mirroring the kernel's bf16-MXU / f32-accumulate
    # math (fc1 activations downcast to bf16 before fc2, as in the kernel).
    x2d = x.astype(jnp.float32).reshape(-1, 784)
    h_ref = jnp.maximum(x2d @ w1.astype(jnp.float32) + b1, 0.0).astype(jnp.bfloat16)
    ref = h_ref.astype(jnp.float32) @ w2.astype(jnp.float32) + b2

    assert out.shape == (B, 10)
    assert out.dtype == x.dtype
    assert jnp.allclose(out.astype(jnp.float32), ref, atol=3e-2, rtol=3e-2)

    print("KERNEL_OK")
</pallas_src>

<mosaic_0001>
module attributes {stable_mosaic.version = 11 : i64} {
  func.func @mlp_kernel(%arg0: i32, %arg1: memref<16x784xbf16, #tpu.memory_space<vmem>>, %arg2: memref<784x256xbf16, #tpu.memory_space<vmem>>, %arg3: memref<1x256xf32, #tpu.memory_space<vmem>>, %arg4: memref<256x128xbf16, #tpu.memory_space<vmem>>, %arg5: memref<1x128xf32, #tpu.memory_space<vmem>>, %arg6: memref<16x128xbf16, #tpu.memory_space<vmem>>) attributes {dimension_semantics = [#tpu.dimension_semantics<parallel>], iteration_bounds = array<i64: 1>, scalar_prefetch = 0 : i64, scratch_operands = 0 : i64, tpu.core_type = #tpu.core_type<tc>, window_params = [{transform_indices = @transform_0, window_bounds = array<i64: 16, 784>}, {pipeline_mode = #tpu.pipeline_mode<synchronous>, transform_indices = @transform_1, window_bounds = array<i64: 784, 256>}, {pipeline_mode = #tpu.pipeline_mode<synchronous>, transform_indices = @transform_2, window_bounds = array<i64: 1, 256>}, {pipeline_mode = #tpu.pipeline_mode<synchronous>, transform_indices = @transform_3, window_bounds = array<i64: 256, 128>}, {pipeline_mode = #tpu.pipeline_mode<synchronous>, transform_indices = @transform_4, window_bounds = array<i64: 1, 128>}, {transform_indices = @transform_5, window_bounds = array<i64: 16, 128>}]} {
    %c0 = arith.constant 0 : index
    %c0_0 = arith.constant 0 : index
    %0 = vector.load %arg1[%c0, %c0_0] : memref<16x784xbf16, #tpu.memory_space<vmem>>, vector<16x784xbf16>
    %c0_1 = arith.constant 0 : index
    %c0_2 = arith.constant 0 : index
    %1 = vector.load %arg2[%c0_1, %c0_2] : memref<784x256xbf16, #tpu.memory_space<vmem>>, vector<784x256xbf16>
    %cst = arith.constant dense<0.000000e+00> : vector<16x256xf32>
    %2 = tpu.matmul %0, %1, %cst {dimension_numbers = #tpu.dot_dimension_numbers<[1], [0], [0], [1], [0, 0, 1, 1], [], []>} : vector<16x784xbf16>, vector<784x256xbf16>, vector<16x256xf32> -> vector<16x256xf32>
    %c0_3 = arith.constant 0 : index
    %c0_4 = arith.constant 0 : index
    %3 = vector.load %arg3[%c0_3, %c0_4] : memref<1x256xf32, #tpu.memory_space<vmem>>, vector<1x256xf32>
    %4 = vector.broadcast %3 : vector<1x256xf32> to vector<16x256xf32>
    %5 = arith.addf %2, %4 : vector<16x256xf32>
    %cst_5 = arith.constant 0.000000e+00 : f32
    %6 = vector.broadcast %cst_5 : f32 to vector<16x256xf32>
    %7 = arith.maximumf %5, %6 : vector<16x256xf32>
    %8 = arith.truncf %7 : vector<16x256xf32> to vector<16x256xbf16>
    %c0_6 = arith.constant 0 : index
    %c0_7 = arith.constant 0 : index
    %9 = vector.load %arg4[%c0_6, %c0_7] : memref<256x128xbf16, #tpu.memory_space<vmem>>, vector<256x128xbf16>
    %cst_8 = arith.constant dense<0.000000e+00> : vector<16x128xf32>
    %10 = tpu.matmul %8, %9, %cst_8 {dimension_numbers = #tpu.dot_dimension_numbers<[1], [0], [0], [1], [0, 0, 1, 1], [], []>} : vector<16x256xbf16>, vector<256x128xbf16>, vector<16x128xf32> -> vector<16x128xf32>
    %c0_9 = arith.constant 0 : index
    %c0_10 = arith.constant 0 : index
    %11 = vector.load %arg5[%c0_9, %c0_10] : memref<1x128xf32, #tpu.memory_space<vmem>>, vector<1x128xf32>
    %12 = vector.broadcast %11 : vector<1x128xf32> to vector<16x128xf32>
    %13 = arith.addf %10, %12 : vector<16x128xf32>
    %14 = arith.truncf %13 : vector<16x128xf32> to vector<16x128xbf16>
    %c0_11 = arith.constant 0 : index
    %c0_12 = arith.constant 0 : index
    %15 = vector.load %arg6[%c0_11, %c0_12] : memref<16x128xbf16, #tpu.memory_space<vmem>>, vector<16x128xbf16>
    tpu.vector_store %arg6[%c0_11, %c0_12], %14 {strides = array<i32>} : memref<16x128xbf16, #tpu.memory_space<vmem>>, vector<16x128xbf16>,
    return
  }
  func.func @transform_0(%arg0: i32) -> (i32, i32) {
    %c0_i32 = arith.constant 0 : i32
    %c0_i32_0 = arith.constant 0 : i32
    return %arg0, %c0_i32 : i32, i32
  }
  func.func @transform_1(%arg0: i32) -> (i32, i32) {
    %c0_i32 = arith.constant 0 : i32
    %c0_i32_0 = arith.constant 0 : i32
    %c0_i32_1 = arith.constant 0 : i32
    return %c0_i32, %c0_i32_0 : i32, i32
  }
  func.func @transform_2(%arg0: i32) -> (i32, i32) {
    %c0_i32 = arith.constant 0 : i32
    %c0_i32_0 = arith.constant 0 : i32
    %c0_i32_1 = arith.constant 0 : i32
    return %c0_i32, %c0_i32_0 : i32, i32
  }
  func.func @transform_3(%arg0: i32) -> (i32, i32) {
    %c0_i32 = arith.constant 0 : i32
    %c0_i32_0 = arith.constant 0 : i32
    %c0_i32_1 = arith.constant 0 : i32
    return %c0_i32, %c0_i32_0 : i32, i32
  }
  func.func @transform_4(%arg0: i32) -> (i32, i32) {
    %c0_i32 = arith.constant 0 : i32
    %c0_i32_0 = arith.constant 0 : i32
    %c0_i32_1 = arith.constant 0 : i32
    return %c0_i32, %c0_i32_0 : i32, i32
  }
  func.func @transform_5(%arg0: i32) -> (i32, i32) {
    %c0_i32 = arith.constant 0 : i32
    %c0_i32_0 = arith.constant 0 : i32
    return %arg0, %c0_i32 : i32, i32
  }
}

</mosaic_0001>

<bundles_post_ra>
// kernel: mlpnet_forward.1
= control target key start
LH: loop header
LB: loop body
LE: loop exit
PB: predicated region body
PF: predicated region fallthrough
CT: control target
= control target key end

     0   :  { %s1835_s0 = inlined_call_operand.vmem [shape: bf16[16,784], index: 0, kind: input, shape index: {}]   ;;  %s1836_s1 = inlined_call_operand.vmem [shape: bf16[784,256], index: 1, kind: input, shape index: {}]   ;;  %s1837_s2 = inlined_call_operand.vmem [shape: f32[1,256], index: 2, kind: input, shape index: {}]   ;;  %s1838_s3 = inlined_call_operand.vmem [shape: bf16[256,128], index: 3, kind: input, shape index: {}]   ;;  %s1839_s4 = inlined_call_operand.vmem [shape: f32[1,128], index: 4, kind: input, shape index: {}]   ;;  %s1840_s5 = inlined_call_operand.hbm [shape: bf16[16,128], index: 5, kind: output, shape index: {}]  }
   0x1   :  { %v1223_v0 = vld [vmem:[%s1836_s1 + $0x104] ss:$8 sps:$4 sm:$0xff]   ;;  %v1225_v1 = vld [vmem:[%s1836_s1 + $0x100] ss:$8 sps:$4 sm:$0xff]   ;;  %v1226_v2 = vld [vmem:[%s1836_s1 + $0x114] ss:$8 sps:$4 sm:$0xff]  }
   0x2   :  { %712 = vmatprep.subr.bf16.mxu0 %v1223_v0  ;;  %v1228_v3 = vld [vmem:[%s1836_s1 + $0x110] ss:$8 sps:$4 sm:$0xff]   ;;  %v1229_v4 = vld [vmem:[%s1836_s1 + $0x124] ss:$8 sps:$4 sm:$0xff]   ;;  %v1231_v5 = vld [vmem:[%s1836_s1 + $0x120] ss:$8 sps:$4 sm:$0xff]  }
   0x3   :  { %713 = vmatpush1.bf16.msra.mxu0 %v1225_v1  ;;  %v1232_v6 = vld [vmem:[%s1836_s1 + $0x134] ss:$8 sps:$4 sm:$0xff]   ;;  %v1234_v7 = vld [vmem:[%s1836_s1 + $0x130] ss:$8 sps:$4 sm:$0xff]   ;;  %v1235_v8 = vld [vmem:[%s1836_s1 + $0x144] ss:$8 sps:$4 sm:$0xff]  }
   0x4   :  { %714 = vmatprep.subr.bf16.mxu0 %v1226_v2  ;;  %v1237_v9 = vld [vmem:[%s1836_s1 + $0x140] ss:$8 sps:$4 sm:$0xff]   ;;  %v1238_v10 = vld [vmem:[%s1836_s1 + $0x154] ss:$8 sps:$4 sm:$0xff]   ;;  %v1240_v11 = vld [vmem:[%s1836_s1 + $0x150] ss:$8 sps:$4 sm:$0xff]  }
   0x5   :  { %v1265_v12 = vld [vmem:[%s1836_s1 + $0x4] ss:$8 sps:$4 sm:$0xff]   ;;  %v1267_v13 = vld [vmem:[%s1836_s1] ss:$8 sps:$4 sm:$0xff]   ;;  %v1271_v15 = vld [vmem:[%s1836_s1 + $0x14] ss:$8 sps:$4 sm:$0xff]  }
   0x6   :  { %v1241_v14 = vld [vmem:[%s1836_s1 + $0x164] ss:$8 sps:$4 sm:$0xff]   ;;  %669 = vmatprep.subr.bf16.mxu1 %v1265_v12  ;;  %v1273_v16 = vld [vmem:[%s1836_s1 + $0x10] ss:$8 sps:$4 sm:$0xff]   ;;  %v1243_v17 = vld [vmem:[%s1836_s1 + $0x160] ss:$8 sps:$4 sm:$0xff]  }
   0x7   :  { %715 = vmatpush1.bf16.msra.mxu0 %v1228_v3  ;;  %670 = vmatpush1.bf16.msra.mxu1 %v1267_v13  ;;  %v1244_v18 = vld [vmem:[%s1836_s1 + $0x174] ss:$8 sps:$4 sm:$0xff]   ;;  %v1277_v19 = vld [vmem:[%s1836_s1 + $0x24] ss:$8 sps:$4 sm:$0xff]   ;;  %v1279_v20 = vld [vmem:[%s1836_s1 + $0x20] ss:$8 sps:$4 sm:$0xff]  }
   0x8   :  { %716 = vmatprep.subr.bf16.mxu0 %v1229_v4  ;;  %671 = vmatprep.subr.bf16.mxu1 %v1271_v15  ;;  %v1282_v21 = vld [vmem:[%s1835_s0 + $0xc] ss:$28 sps:$4 sm:$0xff]   ;;  %v1246_v22 = vld [vmem:[%s1836_s1 + $0x170] ss:$8 sps:$4 sm:$0xff]   ;;  %v1286_v24 = vld [vmem:[%s1836_s1 + $0x34] ss:$8 sps:$4 sm:$0xff]  }
   0x9   :  { %v1247_v23 = vld [vmem:[%s1836_s1 + $0x184] ss:$8 sps:$4 sm:$0xff]   ;;  %744 = vmatprep.mubr.bf16.mxu0 %v1282_v21  ;;  %v1288_v25 = vld [vmem:[%s1836_s1 + $0x30] ss:$8 sps:$4 sm:$0xff]   ;;  %v1249_v26 = vld [vmem:[%s1836_s1 + $0x180] ss:$8 sps:$4 sm:$0xff]  }
   0xa   :  { %v1292_v27 = vld [vmem:[%s1836_s1 + $0x44] ss:$8 sps:$4 sm:$0xff]   ;;  %v1250_v28 = vld [vmem:[%s1836_s1 + $0x194] ss:$8 sps:$4 sm:$0xff]   ;;  %v1294_v29 = vld [vmem:[%s1836_s1 + $0x40] ss:$8 sps:$4 sm:$0xff]  }
   0xb   :  { %717 = vmatpush1.bf16.msra.mxu0 %v1231_v5  ;;  %672 = vmatpush1.bf16.msra.mxu1 %v1273_v16  ;;  %v1252_v30 = vld [vmem:[%s1836_s1 + $0x190] ss:$8 sps:$4 sm:$0xff]   ;;  %v1298_v31 = vld [vmem:[%s1836_s1 + $0x54] ss:$8 sps:$4 sm:$0xff]   ;;  %v1253_v32 = vld [vmem:[%s1836_s1 + $0x1a4] ss:$8 sps:$4 sm:$0xff]  }
   0xc   :  { %718 = vmatprep.subr.bf16.mxu0 %v1232_v6  ;;  %673 = vmatprep.subr.bf16.mxu1 %v1277_v19  ;;  %v1300_v33 = vld [vmem:[%s1836_s1 + $0x50] ss:$8 sps:$4 sm:$0xff]   ;;  %v1255_v34 = vld [vmem:[%s1836_s1 + $0x1a0] ss:$8 sps:$4 sm:$0xff]   ;;  %v1304_v35 = vld [vmem:[%s1836_s1 + $0x64] ss:$8 sps:$4 sm:$0xff]  }
   0xd   :  { %v1256_v36 = vld [vmem:[%s1836_s1 + $0x1b4] ss:$8 sps:$4 sm:$0xff]   ;;  %v1306_v37 = vld [vmem:[%s1836_s1 + $0x60] ss:$8 sps:$4 sm:$0xff]   ;;  %v1258_v38 = vld [vmem:[%s1836_s1 + $0x1b0] ss:$8 sps:$4 sm:$0xff]  }
   0xe   :  { %v1310_v39 = vld [vmem:[%s1836_s1 + $0x74] ss:$8 sps:$4 sm:$0xff]   ;;  %v1259_v40 = vld [vmem:[%s1836_s1 + $0x1c4] ss:$8 sps:$4 sm:$0xff]   ;;  %v1312_v41 = vld [vmem:[%s1836_s1 + $0x70] ss:$8 sps:$4 sm:$0xff]  }
   0xf   :  { %719 = vmatpush1.bf16.msra.mxu0 %v1234_v7  ;;  %674 = vmatpush1.bf16.msra.mxu1 %v1279_v20  ;;  %v1261_v42 = vld [vmem:[%s1836_s1 + $0x1c0] ss:$8 sps:$4 sm:$0xff]   ;;  %v1316_v43 = vld [vmem:[%s1836_s1 + $0x84] ss:$8 sps:$4 sm:$0xff]   ;;  %v1262_v44 = vld [vmem:[%s1836_s1 + $0x1d4] ss:$8 sps:$4 sm:$0xff]  }
  0x10   :  { %720 = vmatprep.subr.bf16.mxu0 %v1235_v8  ;;  %675 = vmatprep.subr.bf16.mxu1 %v1286_v24  ;;  %v1318_v45 = vld [vmem:[%s1836_s1 + $0x80] ss:$8 sps:$4 sm:$0xff]   ;;  %v1264_v46 = vld [vmem:[%s1836_s1 + $0x1d0] ss:$8 sps:$4 sm:$0xff]   ;;  %v1322_v47 = vld [vmem:[%s1836_s1 + $0x94] ss:$8 sps:$4 sm:$0xff]  }
  0x11   :  { %v1268_v48 = vld [vmem:[%s1836_s1 + $0x1e4] ss:$8 sps:$4 sm:$0xff]   ;;  %v1324_v49 = vld [vmem:[%s1836_s1 + $0x90] ss:$8 sps:$4 sm:$0xff]   ;;  %v1270_v50 = vld [vmem:[%s1836_s1 + $0x1e0] ss:$8 sps:$4 sm:$0xff]  }
  0x12   :  { %v1328_v51 = vld [vmem:[%s1836_s1 + $0xa4] ss:$8 sps:$4 sm:$0xff]   ;;  %v1274_v52 = vld [vmem:[%s1836_s1 + $0x1f4] ss:$8 sps:$4 sm:$0xff]   ;;  %v1330_v53 = vld [vmem:[%s1836_s1 + $0xa0] ss:$8 sps:$4 sm:$0xff]  }
  0x13   :  { %721 = vmatpush1.bf16.msra.mxu0 %v1237_v9  ;;  %676 = vmatpush1.bf16.msra.mxu1 %v1288_v25  ;;  %v1276_v54 = vld [vmem:[%s1836_s1 + $0x1f0] ss:$8 sps:$4 sm:$0xff]   ;;  %v1334_v55 = vld [vmem:[%s1836_s1 + $0xb4] ss:$8 sps:$4 sm:$0xff]   ;;  %v1285_v56 = vld [vmem:[%s1836_s1 + $0x204] ss:$8 sps:$4 sm:$0xff]  }
  0x14   :  { %722 = vmatprep.subr.bf16.mxu0 %v1238_v10  ;;  %677 = vmatprep.subr.bf16.mxu1 %v1292_v27  ;;  %v1280_v57 = vld [vmem:[%s1835_s0 + $0x8] ss:$28 sps:$4 sm:$0xff]   ;;  %v1336_v59 = vld [vmem:[%s1836_s1 + $0xb0] ss:$8 sps:$4 sm:$0xff]   ;;  %v1291_v62 = vld [vmem:[%s1836_s1 + $0x214] ss:$8 sps:$4 sm:$0xff]  }
  0x15   :  { %v1283_v58 = vld [vmem:[%s1836_s1 + $0x200] ss:$8 sps:$4 sm:$0xff]   ;;  %v1340_v60 = vld [vmem:[%s1836_s1 + $0xc4] ss:$8 sps:$4 sm:$0xff]   ;;  %v1289_v0 = vld [vmem:[%s1836_s1 + $0x210] ss:$8 sps:$4 sm:$0xff]  }
  0x16   :  { %v1366_v61 = vld [vmem:[%s1835_s0 + $0x4] ss:$28 sps:$4 sm:$0xff]   ;;  %v1346_v1 = vld [vmem:[%s1836_s1 + $0xd4] ss:$8 sps:$4 sm:$0xff]   ;;  %v1348_v5 = vld [vmem:[%s1836_s1 + $0xd0] ss:$8 sps:$4 sm:$0xff]  }
  0x17   :  { %723 = vmatpush1.bf16.msra.mxu0 %v1240_v11  ;;  %678 = vmatpush1.bf16.msra.mxu1 %v1294_v29  ;;  %v1342_v63 = vld [vmem:[%s1836_s1 + $0xc0] ss:$8 sps:$4 sm:$0xff]   ;;  %v1297_v2 = vld [vmem:[%s1836_s1 + $0x224] ss:$8 sps:$4 sm:$0xff]   ;;  %v1378_v4 = vld [vmem:[%s1835_s0 + $0x14] ss:$28 sps:$4 sm:$0xff]  }
  0x18   :  { %724 = vmatprep.subr.bf16.mxu0 %v1241_v14  ;;  %679 = vmatprep.subr.bf16.mxu1 %v1298_v31  ;;  %v1295_v3 = vld [vmem:[%s1836_s1 + $0x220] ss:$8 sps:$4 sm:$0xff]   ;;  %v1352_v6 = vld [vmem:[%s1836_s1 + $0xe4] ss:$8 sps:$4 sm:$0xff]   ;;  %v1303_v7 = vld [vmem:[%s1836_s1 + $0x234] ss:$8 sps:$4 sm:$0xff]  }
  0x19   :  { %701 = vmatprep.mubr.bf16.mxu1 %v1366_v61  ;;  %v1301_v8 = vld [vmem:[%s1836_s1 + $0x230] ss:$8 sps:$4 sm:$0xff]   ;;  %v1354_v9 = vld [vmem:[%s1836_s1 + $0xe0] ss:$8 sps:$4 sm:$0xff]   ;;  %v1358_v10 = vld [vmem:[%s1836_s1 + $0xf4] ss:$8 sps:$4 sm:$0xff]  }
  0x1a   :  { %v1309_v11 = vld [vmem:[%s1836_s1 + $0x244] ss:$8 sps:$4 sm:$0xff]   ;;  %v1360_v12 = vld [vmem:[%s1836_s1 + $0xf0] ss:$8 sps:$4 sm:$0xff]   ;;  %v1307_v13 = vld [vmem:[%s1836_s1 + $0x240] ss:$8 sps:$4 sm:$0xff]  }
  0x1b   :  { %725 = vmatpush1.bf16.msra.mxu0 %v1243_v17  ;;  %680 = vmatpush1.bf16.msra.mxu1 %v1300_v33  ;;  %v1372_v14 = vld [vmem:[%s1836_s1 + $0x304] ss:$8 sps:$4 sm:$0xff]   ;;  %v1315_v15 = vld [vmem:[%s1836_s1 + $0x254] ss:$8 sps:$4 sm:$0xff]   ;;  %v1370_v17 = vld [vmem:[%s1836_s1 + $0x300] ss:$8 sps:$4 sm:$0xff]  }
  0x1c   :  { %726 = vmatprep.subr.bf16.mxu0 %v1244_v18  ;;  %681 = vmatprep.subr.bf16.mxu1 %v1304_v35  ;;  %v1364_v16 = vld [vmem:[%s1835_s0] ss:$28 sps:$4 sm:$0xff]   ;;  %v1313_v18 = vld [vmem:[%s1836_s1 + $0x250] ss:$8 sps:$4 sm:$0xff]  }
  0x1d   :  { %v1380_v19 = vld [vmem:[%s1838_s3 + $0x40] sm:$0xff]  }
  0x1f   :  { %727 = vmatpush1.bf16.msra.mxu0 %v1246_v22  ;;  %682 = vmatpush1.bf16.msra.mxu1 %v1306_v37 }
  0x20   :  { %728 = vmatprep.subr.bf16.mxu0 %v1247_v23  ;;  %683 = vmatprep.subr.bf16.mxu1 %v1310_v39 }
  0x23   :  { %729 = vmatpush1.bf16.msra.mxu0 %v1249_v26  ;;  %684 = vmatpush1.bf16.msra.mxu1 %v1312_v41 }
  0x24   :  { %730 = vmatprep.subr.bf16.mxu0 %v1250_v28  ;;  %685 = vmatprep.subr.bf16.mxu1 %v1316_v43 }
  0x27   :  { %731 = vmatpush1.bf16.msra.mxu0 %v1252_v30  ;;  %686 = vmatpush1.bf16.msra.mxu1 %v1318_v45 }
  0x28   :  { %732 = vmatprep.subr.bf16.mxu0 %v1253_v32  ;;  %687 = vmatprep.subr.bf16.mxu1 %v1322_v47 }
  0x2b   :  { %733 = vmatpush1.bf16.msra.mxu0 %v1255_v34  ;;  %688 = vmatpush1.bf16.msra.mxu1 %v1324_v49 }
  0x2c   :  { %734 = vmatprep.subr.bf16.mxu0 %v1256_v36  ;;  %689 = vmatprep.subr.bf16.mxu1 %v1328_v51 }
  0x2f   :  { %735 = vmatpush1.bf16.msra.mxu0 %v1258_v38  ;;  %690 = vmatpush1.bf16.msra.mxu1 %v1330_v53 }
  0x30   :  { %736 = vmatprep.subr.bf16.mxu0 %v1259_v40  ;;  %691 = vmatprep.subr.bf16.mxu1 %v1334_v55 }
  0x33   :  { %737 = vmatpush1.bf16.msra.mxu0 %v1261_v42  ;;  %692 = vmatpush1.bf16.msra.mxu1 %v1336_v59 }
  0x34   :  { %738 = vmatprep.subr.bf16.mxu0 %v1262_v44  ;;  %693 = vmatprep.subr.bf16.mxu1 %v1340_v60 }
  0x37   :  { %739 = vmatpush1.bf16.msra.mxu0 %v1264_v46  ;;  %694 = vmatpush1.bf16.msra.mxu1 %v1342_v63 }
  0x38   :  { %740 = vmatprep.subr.bf16.mxu0 %v1268_v48  ;;  %695 = vmatprep.subr.bf16.mxu1 %v1346_v1 }
  0x3b   :  { %741 = vmatpush1.bf16.msra.mxu0 %v1270_v50  ;;  %696 = vmatpush1.bf16.msra.mxu1 %v1348_v5 }
  0x3c   :  { %742 = vmatprep.subr.bf16.mxu0 %v1274_v52  ;;  %697 = vmatprep.subr.bf16.mxu1 %v1352_v6 }
  0x3f   :  { %743 = vmatpush1.bf16.msra.mxu0 %v1276_v54  ;;  %698 = vmatpush1.bf16.msra.mxu1 %v1354_v9 }
  0x40   :  { %755 = vmatprep.subr.bf16.mxu0 %v1285_v56  ;;  %699 = vmatprep.subr.bf16.mxu1 %v1358_v10 }
  0x42   :  { %745 = vmatmul.mubr.bf16.vlgmr.msra.gmra.mrb[0].mxu0 %v1280_v57 }
  0x43   :  { %756 = vmatpush1.bf16.msra.mxu0 %v1283_v58  ;;  %787 = vmatprep.mubr.bf16.mxu0 %v1378_v4 }
  0x44   :  { %757 = vmatprep.subr.bf16.mxu0 %v1291_v62  ;;  %700 = vmatpush1.bf16.msra.mxu1 %v1360_v12 }
  0x45   :  { %798 = vmatprep.subr.bf16.mxu1 %v1372_v14 }
  0x47   :  { %758 = vmatpush1.bf16.msra.mxu0 %v1289_v0 }
  0x48   :  { %759 = vmatprep.subr.bf16.mxu0 %v1297_v2 }
  0x4b   :  { %760 = vmatpush1.bf16.msra.mxu0 %v1295_v3 }
  0x4c   :  { %761 = vmatprep.subr.bf16.mxu0 %v1303_v7 }
  0x4f   :  { %762 = vmatpush1.bf16.msra.mxu0 %v1301_v8 }
  0x50   :  { %763 = vmatprep.subr.bf16.mxu0 %v1309_v11 }
  0x53   :  { %764 = vmatpush1.bf16.msra.mxu0 %v1307_v13 }
  0x54   :  { %10 = vsyncpa [#allocation3], 0  ;;  %765 = vmatprep.subr.bf16.mxu0 %v1315_v15  ;;  %v1321_v20 = vld [vmem:[%s1836_s1 + $0x264] ss:$8 sps:$4 sm:$0xff]   ;;  %702 = vmatmul.mubr.bf16.vlgmr.msra.gmra.mrb[0].mxu1 %v1364_v16  ;;  %v1420_v21 = vmov 0   ;;  %vm665_vm0 = vcmask 130048   ;;  %v130_v2 = vlaneseq }
  0x55   :  { %799 = vmatpush1.bf16.msra.mxu1 %v1370_v17  ;;  %830 = vmatprep.mubr.bf16.mxu1 %v1420_v21  ;;  %v1319_v22 = vld [vmem:[%s1836_s1 + $0x260] ss:$8 sps:$4 sm:$0xff]   ;;  %v1327_v23 = vld [vmem:[%s1836_s1 + $0x274] ss:$8 sps:$4 sm:$0xff]   ;;  %v1325_v26 = vld [vmem:[%s1836_s1 + $0x270] ss:$8 sps:$4 sm:$0xff]  }
  0x56   :  { %1181 = vmatprep.subr.bf16.mxu1 %v1380_v19  ;;  %v1379_v24 = vld [vmem:[%s1835_s0 + $0x18] ss:$28 sps:$4 sm:$0xff]   ;;  %v1381_v25 = vld [vmem:[%s1838_s3] sm:$0xff]   ;;  %v1382_v27 = vld [vmem:[%s1838_s3 + $0x48] sm:$0xff]   ;;  %v131_v3 = vshrl.u32 %v130_v2, 7  ;;  %s1421_s10 = smov [#allocation2]  }
  0x57   :  { %766 = vmatpush1.bf16.msra.mxu0 %v1313_v18  ;;  %v1333_v28 = vld [vmem:[%s1836_s1 + $0x284] ss:$8 sps:$4 sm:$0xff]   ;;  %v1331_v30 = vld [vmem:[%s1836_s1 + $0x280] ss:$8 sps:$4 sm:$0xff]   ;;  %v1384_v31 = vld [vmem:[%s1838_s3 + $0x50] sm:$0xff]   ;;  %s1038_s11 = sshll.u32 %s1421_s10, 4  ;;  %s1039_s11 = int_to_ptr.vmem [resolvable:$true] %s1038_s11 }
  0x58   :  { %767 = vmatprep.subr.bf16.mxu0 %v1321_v20  ;;  %v1383_v29 = vld [vmem:[%s1838_s3 + $0x8] sm:$0xff]   ;;  %v1339_v32 = vld [vmem:[%s1836_s1 + $0x294] ss:$8 sps:$4 sm:$0xff]   ;;  %v1337_v34 = vld [vmem:[%s1836_s1 + $0x290] ss:$8 sps:$4 sm:$0xff]   ;;  %v132_v4 = vsub.s32 0, %v131_v3  ;;  %p1401_p1 = scmp.lt.s32.totalorder %s1039_s11, %s1039_s11 }
  0x59   :  { %v1385_v33 = vld [vmem:[%s1838_s3 + $0x10] sm:$0xff]   ;;  %v1345_v35 = vld [vmem:[%s1836_s1 + $0x2a4] ss:$8 sps:$4 sm:$0xff]   ;;  %v1343_v36 = vld [vmem:[%s1836_s1 + $0x2a0] ss:$8 sps:$4 sm:$0xff]   ;;  %v136_v6 = vsub.s32 1, %v131_v3 }
  0x5a   :  { %v1351_v37 = vld [vmem:[%s1836_s1 + $0x2b4] ss:$8 sps:$4 sm:$0xff]   ;;  %v1349_v38 = vld [vmem:[%s1836_s1 + $0x2b0] ss:$8 sps:$4 sm:$0xff]   ;;  %v1357_v39 = vld [vmem:[%s1836_s1 + $0x2c4] ss:$8 sps:$4 sm:$0xff]  }
  0x5b   :  { %768 = vmatpush1.bf16.msra.mxu0 %v1319_v22  ;;  %v1355_v40 = vld [vmem:[%s1836_s1 + $0x2c0] ss:$8 sps:$4 sm:$0xff]   ;;  %v1363_v41 = vld [vmem:[%s1836_s1 + $0x2d4] ss:$8 sps:$4 sm:$0xff]   ;;  %v1361_v42 = vld [vmem:[%s1836_s1 + $0x2d0] ss:$8 sps:$4 sm:$0xff]  }
  0x5c   :  { %769 = vmatprep.subr.bf16.mxu0 %v1327_v23  ;;  %1154 = vmatmul.mubr.msk.bf16.vlgmr.msra.gmra.mrb[4].mxu1 %vm665_vm0, %v1379_v24  ;;  %v1369_v43 = vld [vmem:[%s1836_s1 + $0x2e4] ss:$8 sps:$4 sm:$0xff]   ;;  %v1367_v44 = vld [vmem:[%s1836_s1 + $0x2e0] ss:$8 sps:$4 sm:$0xff]   ;;  %v1375_v45 = vld [vmem:[%s1836_s1 + $0x2f4] ss:$8 sps:$4 sm:$0xff]  }
  0x5d   :  { %1182 = vmatpush3.bf16.msra.mxu1 %v1381_v25  ;;  %v1373_v46 = vld [vmem:[%s1836_s1 + $0x2f0] ss:$8 sps:$4 sm:$0xff]   ;;  %v1388_v50 = vld [vmem:[%s1838_s3 + $0x60] sm:$0xff]   ;;  %v1390_v52 = vld [vmem:[%s1838_s3 + $0x68] sm:$0xff]   ;;  %s1396_s12 = scalar_lea.vmem %s1039_s11, 128 }
  0x5e   :  { %1183 = vmatprep.subr.bf16.mxu1 %v1382_v27  ;;  %v1376_v47 = vld [vmem:[%s1835_s0 + $0x10] ss:$28 sps:$4 sm:$0xff]   ;;  %v1386_v48 = vld [vmem:[%s1838_s3 + $0x58] sm:$0xff]   ;;  %v1389_v51 = vld [vmem:[%s1838_s3 + $0x20] sm:$0xff]   ;;  %p1397_p0 = scmp.ne.s32.totalorder %s1039_s11, %s1396_s12  ;;  %p1402_p2 = scmp.lt.s32.totalorder %s1396_s12, %s1396_s12 }
  0x5f   :  { %770 = vmatpush1.bf16.msra.mxu0 %v1325_v26  ;;  %v1387_v49 = vld [vmem:[%s1838_s3 + $0x18] sm:$0xff]   ;;  %v1391_v53 = vld [vmem:[%s1838_s3 + $0x28] sm:$0xff]   ;;  %v1392_v54 = vld [vmem:[%s1838_s3 + $0x70] sm:$0xff]  }
  0x60   :  { %771 = vmatprep.subr.bf16.mxu0 %v1333_v28  ;;  %v1393_v55 = vld [vmem:[%s1838_s3 + $0x30] sm:$0xff]   ;;  %v1394_v56 = vld [vmem:[%s1838_s3 + $0x78] sm:$0xff]   ;;  %v128_v5 = vld [vmem:[%s1837_s2] sm:$0x3]  ;;  %p1403_p3 = por %p1402_p2, %p1401_p1 }
  0x61   :  { %1184 = vmatpush3.bf16.msra.mxu1 %v1383_v29  ;;  %v1395_v57 = vld [vmem:[%s1838_s3 + $0x38] sm:$0xff]   ;;  %v133_v7 = vrot.slane %v128_v5, %v132_v4  ;;  %v137_v8 = vrot.slane %v128_v5, %v136_v6 }
  0x62   :  { %1185 = vmatprep.subr.bf16.mxu1 %v1384_v31  ;;  %p1404_p4 = pnand %p1403_p3, %p1397_p0 }
  0x63   :  { %772 = vmatpush1.bf16.msra.mxu0 %v1331_v30 }
  0x64   :  { %773 = vmatprep.subr.bf16.mxu0 %v1339_v32 }
  0x65   :  { %1186 = vmatpush3.bf16.msra.mxu1 %v1385_v33 }
  0x66   :  { %1187 = vmatprep.subr.bf16.mxu1 %v1386_v48 }
  0x67   :  { %774 = vmatpush1.bf16.msra.mxu0 %v1337_v34 }
  0x68   :  { %775 = vmatprep.subr.bf16.mxu0 %v1345_v35  ;;  %v1155_v35 = vld [vmem:[%s1839_s4] ss:$0 sm:$0xff] }
  0x69   :  { %1188 = vmatpush3.bf16.msra.mxu1 %v1387_v49 }
  0x6a   :  { %1189 = vmatprep.subr.bf16.mxu1 %v1388_v50 }
  0x6b   :  { %776 = vmatpush1.bf16.msra.mxu0 %v1343_v36 }
  0x6c   :  { %777 = vmatprep.subr.bf16.mxu0 %v1351_v37 }
  0x6d   :  { %1190 = vmatpush3.bf16.msra.mxu1 %v1389_v51 }
  0x6e   :  { %1191 = vmatprep.subr.bf16.mxu1 %v1390_v52 }
  0x6f   :  { %778 = vmatpush1.bf16.msra.mxu0 %v1349_v38 }
  0x70   :  { %779 = vmatprep.subr.bf16.mxu0 %v1357_v39 }
  0x71   :  { %1192 = vmatpush3.bf16.msra.mxu1 %v1391_v53 }
  0x72   :  { %1193 = vmatprep.subr.bf16.mxu1 %v1392_v54 }
  0x73   :  { %780 = vmatpush1.bf16.msra.mxu0 %v1355_v40 }
  0x74   :  { %781 = vmatprep.subr.bf16.mxu0 %v1363_v41 }
  0x75   :  { %1194 = vmatpush3.bf16.msra.mxu1 %v1393_v55 }
  0x76   :  { %1195 = vmatprep.subr.bf16.mxu1 %v1394_v56 }
  0x77   :  { %782 = vmatpush1.bf16.msra.mxu0 %v1361_v42 }
  0x78   :  { %783 = vmatprep.subr.bf16.mxu0 %v1369_v43 }
  0x79   :  { %1196 = vmatpush3.bf16.msra.mxu1 %v1395_v57 }
  0x7b   :  { %784 = vmatpush1.bf16.msra.mxu0 %v1367_v44 }
  0x7c   :  { %785 = vmatprep.subr.bf16.mxu0 %v1375_v45 }
  0x7f   :  { %786 = vmatpush1.bf16.msra.mxu0 %v1373_v46 }
  0x82   :  { %788 = vmatmul.mubr.bf16.vlgmr.msra.gmra.mrb[0].mxu0 %v1376_v47 }
 0x127   :  { %v703_v58 = vpop.f32.mrb[0].mxu1 }
 0x128   :  { %v705_v59 = vpop.f32.mrb[1].mxu1  ;;  %v704_v9 = vadd.f32 %v703_v58, %v133_v7 }
 0x129   :  { %v707_v60 = vpop.f32.mrb[2].mxu1  ;;  %v706_v10 = vadd.f32 %v705_v59, %v137_v8 }
 0x12a   :  { %v709_v61 = vpop.f32.mrb[3].mxu1  ;;  %v708_v12 = vadd.f32 %v707_v60, %v133_v7 }
 0x12b   :  { %v710_v15 = vadd.f32 %v709_v61, %v137_v8 }
 0x12f   :  { %v832_v62 = vpop.f32.mrb[4].mxu1 }
 0x130   :  { %v834_v63 = vpop.f32.mrb[5].mxu1 }
 0x131   :  { %v836_v0 = vpop.f32.mrb[6].mxu1 }
 0x132   :  { %v838_v1 = vpop.f32.mrb[7].mxu1 }
 0x155   :  { %v789_v11 = vpop.f32.mrb[0].mxu0 }
 0x156   :  { %v1204_v13 = vadd.f32 %v789_v11, %v704_v9  ;;  %v791_v14 = vpop.f32.mrb[1].mxu0 }
 0x157   :  { %v1207_v16 = vadd.f32 %v791_v14, %v706_v10  ;;  %v793_v17 = vpop.f32.mrb[2].mxu0 }
 0x158   :  { %v1205_v18 = vadd.f32 %v1204_v13, %v832_v62  ;;  %v1210_v19 = vadd.f32 %v793_v17, %v708_v12  ;;  %v795_v20 = vpop.f32.mrb[3].mxu0 }
 0x159   :  { %v1208_v21 = vadd.f32 %v1207_v16, %v834_v63  ;;  %v1213_v22 = vadd.f32 %v795_v20, %v710_v15 }
 0x15a   :  { %v1211_v23 = vadd.f32 %v1210_v19, %v836_v0  ;;  %v841_v25 = vmax.f32 %v1205_v18, 0.0 }
 0x15b   :  { %v1214_v24 = vadd.f32 %v1213_v22, %v838_v1  ;;  %v842_v27 = vmax.f32 %v1208_v21, 0.0 }
 0x15c   :  { %v843_v26 = vmax.f32 %v1211_v23, 0.0 }
 0x15d   :  { %v844_v28 = vmax.f32 %v1214_v24, 0.0 }
 0x15e   :  { %v845_v29 = vpack.c.bf16 %v843_v26, %v841_v25 }
 0x15f   :  { %v846_v30 = vpack.c.bf16 %v844_v28, %v842_v27 }
 0x161   :  { %1014 = vmatprep.mubr.bf16.mxu1 %v846_v30 }
 0x162   :  { %1015 = vmatmul.mubr.bf16.vlgmr.msra.gmra.mrb[8].mxu1 %v845_v29 }
 0x235   :  { %v1197_v31 = vpop.f32.mrb[8].mxu1 }
 0x236   :  { %v1198_v32 = vpop.f32.mrb[9].mxu1 }
 0x237   :  { %v1199_v33 = vadd.f32 %v1198_v32, %v1197_v31  ;;  %v1200_v34 = vpop.f32.mrb[10].mxu1 }
 0x238   :  { %v1201_v36 = vpop.f32.mrb[11].mxu1 }
 0x239   :  { %v1202_v37 = vadd.f32 %v1201_v36, %v1200_v34  ;;  %v1017_v38 = vadd.f32 %v1199_v33, %v1155_v35 }
 0x23b   :  { %v1020_v39 = vadd.f32 %v1202_v37, %v1155_v35 }
 0x23d   :  { %v1179_v40 = vpack.c.bf16 %v1020_v39, %v1017_v38 }
 0x23f   :  { %1180 = vst [vmem:[#allocation2] sm:$0xff] %v1179_v40  }
 0x240   :  { %1407 = shalt.err (!%p1404_p4)
}
 0x241   :  { %s1408_s4 = scalar_lea.hbm %s1840_s5, 128 }
 0x242   :  { %p1409_p5 = scmp.ne.s32.totalorder %s1840_s5, %s1408_s4  ;;  %p1412_p6 = scmp.lt.u32.totalorder %s1408_s4, %s1840_s5 }
 0x244   :  { %p1414_p7 = pnand %p1412_p6, %p1409_p5 }
 0x246   :  { %1417 = shalt.err (!%p1414_p7)
}
 0x247   :  { %s1422_s19 = smov 64   ;;  %s1423_s20 = smov 4  }
 0x248   :  { %1044 = dma.vmem_to_hbm [thread:$0]  %s1039_s11, 128, %s1840_s5, [#allocation3], %s1422_s19, %s1422_s19, %s1423_s20  }
 0x249   :  { %1418 = dma.done.wait [#allocation3], 128  }
 0x24a   :  { %1419 = vsyncadd [#allocation3], 4294967168 }
 0x24b   :  { %1048 = vsyncpa [#allocation3], 1 }

</bundles_post_ra>
